<compile_context>
chip_gen: v6e
topology: v6e:2x2x1
jax: 0.10.0
libtpu: 0.0.40
codegen_flags: <defaults>
</compile_context>

<pallas_src>
import math

import jax
import jax.numpy as jnp
from jax import lax
from jax.experimental import pallas as pl
from jax.experimental.pallas import tpu as pltpu


# ---------------------------------------------------------------------------
# Small host-side helpers.
# ---------------------------------------------------------------------------
def _round_up(x, m):
    return ((x + m - 1) // m) * m


def _largest_divisor(n, cap, multiple=1):
    """Largest divisor of n that is <= cap and a multiple of `multiple`."""
    cap = max(multiple, min(n, int(cap)))
    t = (cap // multiple) * multiple
    while t >= multiple:
        if n % t == 0:
            return t
        t -= multiple
    return n


def _vmem_budget_bytes(frac=0.75):
    """~75% of per-core VMEM (v5e/v6e: 128 MiB, v7x: 64 MiB)."""
    try:
        cap = int(pltpu.get_tpu_info().vmem_capacity_bytes)
    except Exception:
        cap = 64 * 1024 * 1024  # conservative fallback (v7x per-core VMEM)
    return max(32 * 1024 * 1024, int(cap * frac))


# ---------------------------------------------------------------------------
# Non-recurrent input projection: (M, I) @ (I, 4H) + bias, tiled over M and N.
# ---------------------------------------------------------------------------
def _input_proj_kernel(x_ref, wih_t_ref, b_ref, out_ref):
    out_ref[...] = (
        jnp.dot(x_ref[...], wih_t_ref[...], preferred_element_type=jnp.float32)
        + b_ref[...]
    ).astype(out_ref.dtype)


def input_projection(x2d, wih_t, bias, *, vmem_limit):
    """x2d: (M, I); wih_t: (I, 4H); bias: (1, 4H) -> (M, 4H).  M % 8 == 0."""
    m, i = x2d.shape
    g = wih_t.shape[-1]

    tm = _largest_divisor(m, 512, 8)
    if g % 128 == 0:
        tn = _largest_divisor(g // 128, 4, 1) * 128  # lane-dense, up to 512 wide
    else:
        tn = g

    return pl.pallas_call(
        _input_proj_kernel,
        grid=(m // tm, g // tn),
        in_specs=[
            pl.BlockSpec((tm, i), lambda r, n: (r, 0)),
            pl.BlockSpec((i, tn), lambda r, n: (0, n)),
            pl.BlockSpec((1, tn), lambda r, n: (0, n)),
        ],
        out_specs=pl.BlockSpec((tm, tn), lambda r, n: (r, n)),
        out_shape=jax.ShapeDtypeStruct((m, g), x2d.dtype),
        compiler_params=pltpu.CompilerParams(
            dimension_semantics=("parallel", "parallel"),
            vmem_limit_bytes=vmem_limit),
    )(x2d, wih_t, bias)


# ---------------------------------------------------------------------------
# Recurrent kernel: grid = (batch tiles [parallel], time chunks [arbitrary]).
# ---------------------------------------------------------------------------
def _lstm_recurrent_kernel(xp_ref, h0_ref, c0_ref, whh_hbm_ref,
                           out_ref, hn_ref, cn_ref,
                           h_scr, c_scr, w_scr, dma_sem):
    t_blk = pl.program_id(1)

    # Copy the grid-invariant recurrent weight into a persistent VMEM scratch
    # once per batch tile (single resident copy; never double-buffered).
    @pl.when(t_blk == 0)
    def _():
        cp = pltpu.make_async_copy(whh_hbm_ref, w_scr, dma_sem)
        cp.start()
        cp.wait()
        # (Re)load the initial state at the start of each batch tile.
        h_scr[...] = h0_ref[...]
        c_scr[...] = c0_ref[...]

    whh_t = w_scr[...]            # (H, 4H), pre-transposed on the host
    T = out_ref.shape[0]          # static chunk length
    H = h_scr.shape[-1]

    def step(t, carry):
        h, c = carry
        # Only the h @ W_hh.T matmul sits on the serial path; the input
        # projection (incl. both biases) was hoisted out of the recurrence.
        gates = xp_ref[t] + jnp.dot(h, whh_t,
                                    preferred_element_type=jnp.float32)
        # PyTorch gate layout along the 4H axis: [i, f, g, o].
        i_g = jax.nn.sigmoid(gates[:, 0 * H:1 * H])
        f_g = jax.nn.sigmoid(gates[:, 1 * H:2 * H])
        g_g = jnp.tanh(gates[:, 2 * H:3 * H])
        o_g = jax.nn.sigmoid(gates[:, 3 * H:4 * H])
        c = f_g * c + i_g * g_g
        h = o_g * jnp.tanh(c)
        out_ref[t] = h.astype(out_ref.dtype)
        return (h, c)

    # fori_loop with a small unroll factor: bounded vreg live ranges (no
    # spills at production sizes) while keeping LLO scheduling visibility.
    h, c = lax.fori_loop(0, T, step, (h_scr[...], c_scr[...]), unroll=2)

    # Persist the carry across time chunks.
    h_scr[...] = h
    c_scr[...] = c

    # Final state written only once per batch tile, on the last chunk.
    @pl.when(t_blk == pl.num_programs(1) - 1)
    def _():
        hn_ref[...] = h.astype(hn_ref.dtype)
        cn_ref[...] = c.astype(cn_ref.dtype)


def lstm_layer(x, h0, c0, w_ih, w_hh, b_ih, b_hh, *, vmem_budget):
    """One LSTM layer on a batch already padded to a multiple of 8.

    x: (S, Bp, I); h0/c0: (Bp, H); w_ih: (4H, I); w_hh: (4H, H); biases: (4H,)
    Returns (out (S, Bp, H), h_n (Bp, H), c_n (Bp, H)).
    """
    S, Bp, I = x.shape
    H = h0.shape[-1]
    G = 4 * H

    # Host-side prep (done once, outside the serial loop).
    bias = (b_ih + b_hh).reshape(1, G).astype(jnp.float32)
    wih_t = jnp.transpose(w_ih).astype(jnp.float32)   # (I, 4H)
    whh_t = jnp.transpose(w_hh).astype(jnp.float32)   # (H, 4H)

    # Hoisted, non-recurrent input projection for the whole sequence.
    xp = input_projection(x.reshape(S * Bp, I), wih_t, bias,
                          vmem_limit=vmem_budget)
    xp = xp.reshape(S, Bp, G)

    # Batch tile: parallel axis (shards across TensorCores on multi-TC chips).
    TB = _largest_divisor(Bp, 128, 8)
    nb = Bp // TB

    # Time-chunk length sized from the VMEM budget (not a fixed cap).
    itemsize = 4
    fixed = H * G * itemsize + 12 * TB * H * itemsize         # weight + state bufs
    per_t = (3 * TB * G + 2 * TB * H) * itemsize              # xp(3-buf) + out(2-buf)
    t_cap = max(1, (vmem_budget - fixed) // per_t)
    T = _largest_divisor(S, t_cap, 1)
    # TODO(synk): if S is prime and large this degenerates to T=1; pad S instead.
    nt = S // T

    xp_spec_kwargs = {}
    if nt >= 3:
        # Deeper pipelining on the xp chunk stream once there are enough chunks.
        xp_spec_kwargs["pipeline_mode"] = pl.Buffered(3)
    xp_spec = pl.BlockSpec((T, TB, G), lambda b, t: (t, b, 0), **xp_spec_kwargs)

    out_shapes = (
        jax.ShapeDtypeStruct((S, Bp, H), x.dtype),   # per-step outputs
        jax.ShapeDtypeStruct((Bp, H), x.dtype),      # final hidden
        jax.ShapeDtypeStruct((Bp, H), x.dtype),      # final cell
    )
    return pl.pallas_call(
        _lstm_recurrent_kernel,
        grid=(nb, nt),
        in_specs=[
            xp_spec,                                          # x_proj chunk
            pl.BlockSpec((TB, H), lambda b, t: (b, 0)),       # h0 tile
            pl.BlockSpec((TB, H), lambda b, t: (b, 0)),       # c0 tile
            pl.BlockSpec(memory_space=pl.ANY),                # W_hh.T stays in HBM
        ],
        out_specs=(
            pl.BlockSpec((T, TB, H), lambda b, t: (t, b, 0)),
            pl.BlockSpec((TB, H), lambda b, t: (b, 0)),
            pl.BlockSpec((TB, H), lambda b, t: (b, 0)),
        ),
        out_shape=out_shapes,
        scratch_shapes=[
            pltpu.VMEM((TB, H), jnp.float32),   # h carry across chunks
            pltpu.VMEM((TB, H), jnp.float32),   # c carry across chunks
            pltpu.VMEM((H, G), jnp.float32),    # persistent W_hh.T copy
            pltpu.SemaphoreType.DMA,            # weight-copy semaphore
        ],
        compiler_params=pltpu.CompilerParams(
            dimension_semantics=("parallel", "arbitrary"),
            vmem_limit_bytes=vmem_budget),
    )(xp, h0, c0, whh_t)


def decoder_forward(inp, h0, c0, params):
    """Multi-layer LSTM forward == PyTorch nn.LSTM(inp, (h0, c0))."""
    S, B, _ = inp.shape
    Bp = _round_up(B, 8)                     # sublane-granule batch padding
    pad = Bp - B
    x = jnp.pad(inp, ((0, 0), (0, pad), (0, 0))) if pad else inp
    hp = jnp.pad(h0, ((0, 0), (0, pad), (0, 0))) if pad else h0
    cp = jnp.pad(c0, ((0, 0), (0, pad), (0, 0))) if pad else c0

    vmem_budget = _vmem_budget_bytes()

    # TODO(synk): overlap layer l+1's input_projection with layer l's recurrence
    # (wavefront over chunks) to fill the latency-bound serial matmul's dead time.
    h_finals, c_finals = [], []
    for l, (w_ih, w_hh, b_ih, b_hh) in enumerate(params):
        x, h_n, c_n = lstm_layer(x, hp[l], cp[l], w_ih, w_hh, b_ih, b_hh,
                                 vmem_budget=vmem_budget)
        h_finals.append(h_n)
        c_finals.append(c_n)

    out = x[:, :B, :]
    h_n = jnp.stack(h_finals, axis=0)[:, :B, :]
    c_n = jnp.stack(c_finals, axis=0)[:, :B, :]
    return out, h_n, c_n


def decoder_reference(inp, h0, c0, params):
    """Pure-JAX reference (lax.scan) for correctness checking."""
    x = inp
    hs, cs = [], []
    for l, (w_ih, w_hh, b_ih, b_hh) in enumerate(params):
        H = h0.shape[-1]

        def step(carry, x_t, w_ih=w_ih, w_hh=w_hh, b_ih=b_ih, b_hh=b_hh, H=H):
            h, c = carry
            gates = x_t @ w_ih.T + b_ih + h @ w_hh.T + b_hh
            i = jax.nn.sigmoid(gates[:, 0 * H:1 * H])
            f = jax.nn.sigmoid(gates[:, 1 * H:2 * H])
            g = jnp.tanh(gates[:, 2 * H:3 * H])
            o = jax.nn.sigmoid(gates[:, 3 * H:4 * H])
            c2 = f * c + i * g
            h2 = o * jnp.tanh(c2)
            return (h2, c2), h2

        (h_n, c_n), out = jax.lax.scan(step, (h0[l], c0[l]), x)
        x = out
        hs.append(h_n)
        cs.append(c_n)
    return x, jnp.stack(hs, axis=0), jnp.stack(cs, axis=0)


if __name__ == "__main__":
    # Small shapes consistent with the module's forward.
    SEQ, BATCH, INPUT, HIDDEN, LAYERS = 8, 2, 16, 32, 2

    key = jax.random.PRNGKey(0)
    k_inp, k_h, k_c, k_par = jax.random.split(key, 4)

    inp = jax.random.normal(k_inp, (SEQ, BATCH, INPUT), dtype=jnp.float32)
    h0 = jax.random.normal(k_h, (LAYERS, BATCH, HIDDEN), dtype=jnp.float32)
    c0 = jax.random.normal(k_c, (LAYERS, BATCH, HIDDEN), dtype=jnp.float32)

    # PyTorch-style LSTM init: U(-k, k), k = 1/sqrt(H).
    bound = 1.0 / math.sqrt(HIDDEN)
    params = []
    pkeys = jax.random.split(k_par, LAYERS * 4)
    for l in range(LAYERS):
        in_dim = INPUT if l == 0 else HIDDEN
        kw = pkeys[4 * l: 4 * l + 4]
        w_ih = jax.random.uniform(kw[0], (4 * HIDDEN, in_dim), jnp.float32, -bound, bound)
        w_hh = jax.random.uniform(kw[1], (4 * HIDDEN, HIDDEN), jnp.float32, -bound, bound)
        b_ih = jax.random.uniform(kw[2], (4 * HIDDEN,), jnp.float32, -bound, bound)
        b_hh = jax.random.uniform(kw[3], (4 * HIDDEN,), jnp.float32, -bound, bound)
        params.append((w_ih, w_hh, b_ih, b_hh))

    out, h_n, c_n = decoder_forward(inp, h0, c0, params)
    out = jax.block_until_ready(out)
    h_n = jax.block_until_ready(h_n)
    c_n = jax.block_until_ready(c_n)

    # Correctness check against a pure-JAX reference.
    out_ref, h_ref, c_ref = decoder_reference(inp, h0, c0, params)
    assert out.shape == (SEQ, BATCH, HIDDEN)
    assert h_n.shape == (LAYERS, BATCH, HIDDEN)
    assert c_n.shape == (LAYERS, BATCH, HIDDEN)
    assert jnp.allclose(out, out_ref, atol=1e-5, rtol=1e-5)
    assert jnp.allclose(h_n, h_ref, atol=1e-5, rtol=1e-5)
    assert jnp.allclose(c_n, c_ref, atol=1e-5, rtol=1e-5)

    print("KERNEL_OK")
</pallas_src>

<mosaic_0001>
module attributes {stable_mosaic.version = 11 : i64} {
  func.func @_input_proj_kernel(%arg0: i32, %arg1: i32, %arg2: memref<64x16xf32, #tpu.memory_space<vmem>>, %arg3: memref<16x128xf32, #tpu.memory_space<vmem>>, %arg4: memref<1x128xf32, #tpu.memory_space<vmem>>, %arg5: memref<64x128xf32, #tpu.memory_space<vmem>>) attributes {dimension_semantics = [#tpu.dimension_semantics<parallel>, #tpu.dimension_semantics<parallel>], iteration_bounds = array<i64: 1, 1>, scalar_prefetch = 0 : i64, scratch_operands = 0 : i64, tpu.core_type = #tpu.core_type<tc>, window_params = [{transform_indices = @transform_0, window_bounds = array<i64: 64, 16>}, {transform_indices = @transform_1, window_bounds = array<i64: 16, 128>}, {transform_indices = @transform_2, window_bounds = array<i64: 1, 128>}, {transform_indices = @transform_3, window_bounds = array<i64: 64, 128>}]} {
    %c0 = arith.constant 0 : index
    %c0_0 = arith.constant 0 : index
    %0 = vector.load %arg2[%c0, %c0_0] : memref<64x16xf32, #tpu.memory_space<vmem>>, vector<64x16xf32>
    %c0_1 = arith.constant 0 : index
    %c0_2 = arith.constant 0 : index
    %1 = vector.load %arg3[%c0_1, %c0_2] : memref<16x128xf32, #tpu.memory_space<vmem>>, vector<16x128xf32>
    %cst = arith.constant dense<0.000000e+00> : vector<64x128xf32>
    %2 = tpu.matmul %0, %1, %cst {dimension_numbers = #tpu.dot_dimension_numbers<[1], [0], [0], [1], [0, 0, 1, 1], [], []>} : vector<64x16xf32>, vector<16x128xf32>, vector<64x128xf32> -> vector<64x128xf32>
    %c0_3 = arith.constant 0 : index
    %c0_4 = arith.constant 0 : index
    %3 = vector.load %arg4[%c0_3, %c0_4] : memref<1x128xf32, #tpu.memory_space<vmem>>, vector<1x128xf32>
    %4 = vector.broadcast %3 : vector<1x128xf32> to vector<64x128xf32>
    %5 = arith.addf %2, %4 : vector<64x128xf32>
    %c0_5 = arith.constant 0 : index
    %c0_6 = arith.constant 0 : index
    %6 = vector.load %arg5[%c0_5, %c0_6] : memref<64x128xf32, #tpu.memory_space<vmem>>, vector<64x128xf32>
    tpu.vector_store %arg5[%c0_5, %c0_6], %5 {strides = array<i32>} : memref<64x128xf32, #tpu.memory_space<vmem>>, vector<64x128xf32>,
    return
  }
  func.func @transform_0(%arg0: i32, %arg1: i32) -> (i32, i32) {
    %c0_i32 = arith.constant 0 : i32
    %c0_i32_0 = arith.constant 0 : i32
    return %arg0, %c0_i32 : i32, i32
  }
  func.func @transform_1(%arg0: i32, %arg1: i32) -> (i32, i32) {
    %c0_i32 = arith.constant 0 : i32
    %c0_i32_0 = arith.constant 0 : i32
    return %c0_i32, %arg1 : i32, i32
  }
  func.func @transform_2(%arg0: i32, %arg1: i32) -> (i32, i32) {
    %c0_i32 = arith.constant 0 : i32
    %c0_i32_0 = arith.constant 0 : i32
    return %c0_i32, %arg1 : i32, i32
  }
  func.func @transform_3(%arg0: i32, %arg1: i32) -> (i32, i32) {
    %c0_i32 = arith.constant 0 : i32
    return %arg0, %arg1 : i32, i32
  }
}

</mosaic_0001>

<bundles_post_ra>
// kernel: tpu_custom_call.1
= control target key start
LH: loop header
LB: loop body
LE: loop exit
PB: predicated region body
PF: predicated region fallthrough
CT: control target
= control target key end

     0   :  { %vm32_vm0 = vcmask 130048   ;;  %s317_s0 = inlined_call_operand.vmem [shape: f32[64,16], index: 0, kind: input, shape index: {}]   ;;  %s318_s1 = inlined_call_operand.vmem [shape: f32[16,128], index: 1, kind: input, shape index: {}]   ;;  %s319_s2 = inlined_call_operand.vmem [shape: f32[1,128], index: 2, kind: input, shape index: {}]   ;;  %s320_s3 = inlined_call_operand.hbm [shape: f32[64,128], index: 3, kind: output, shape index: {}]  }
   0x1   :  { %v24_v0 = vld [vmem:[%s318_s1 + $0x8] sm:$0xff]  ;;  %v23_v1 = vld [vmem:[%s318_s1] sm:$0xff] }
   0x2   :  { %205 = vmatprep.subr.mxu0 %v24_v0  ;;  %221 = vmatprep.subr.mxu1 %v24_v0  ;;  %v15_v2 = vld [vmem:[%s317_s0] sm:$0xff]  ;;  %v16_v4 = vld [vmem:[%s317_s0 + $0x8] sm:$0xff] }
   0x3   :  { %206 = vmatpush3.msra.mxu0 %v24_v0  ;;  %223 = vmatpush3.msra.mxu1 %v24_v0  ;;  %v19_v3 = vld [vmem:[%s317_s0 + $0x20] sm:$0xff]  ;;  %v20_v5 = vld [vmem:[%s317_s0 + $0x28] sm:$0xff] }
   0x4   :  { %207 = vmatprep.subr.mxu0 %v23_v1  ;;  %222 = vmatprep.subr.mxu1 %v23_v1 }
   0x5   :  { %8 = vsyncpa [#allocation3], 0  ;;  %208 = vmatpush3.msra.mxu0 %v23_v1  ;;  %224 = vmatpush3.msra.mxu1 %v23_v1  ;;  %v17_v6 = vld [vmem:[%s317_s0 + $0x10] sm:$0xff]  ;;  %v18_v8 = vld [vmem:[%s317_s0 + $0x18] sm:$0xff]  ;;  %s250_s6 = smov [#allocation2]  }
   0x6   :  { %v21_v7 = vld [vmem:[%s317_s0 + $0x30] sm:$0xff]  ;;  %209 = vmatprep.mubr.msk.f32.mxu0 %vm32_vm0, %v15_v2  ;;  %215 = vmatprep.mubr.msk.f32.mxu1 %vm32_vm0, %v19_v3  ;;  %v22_v9 = vld [vmem:[%s317_s0 + $0x38] sm:$0xff]  ;;  %v186_v10 = vld [vmem:[%s319_s2] ss:$0 sm:$0xff]  ;;  %s175_s0 = sshll.u32 %s250_s6, 4  ;;  %s176_s0 = int_to_ptr.vmem [resolvable:$true] %s175_s0 }
   0x7   :  { %210 = vmatmul.mubr.msk.f32.vlgmr.msra.gmra.mxu0 %vm32_vm0, %v16_v4  ;;  %216 = vmatmul.mubr.msk.f32.vlgmr.msra.gmra.mxu1 %vm32_vm0, %v20_v5  ;;  %s228_s2 = scalar_lea.vmem %s176_s0, 1024  ;;  %p233_p1 = scmp.lt.s32.totalorder %s176_s0, %s176_s0 }
   0x8   :  { %212 = vmatprep.mubr.msk.f32.mxu0 %vm32_vm0, %v17_v6  ;;  %218 = vmatprep.mubr.msk.f32.mxu1 %vm32_vm0, %v21_v7  ;;  %p229_p0 = scmp.ne.s32.totalorder %s176_s0, %s228_s2  ;;  %p234_p2 = scmp.lt.s32.totalorder %s228_s2, %s228_s2 }
   0xa   :  { %p235_p3 = por %p234_p2, %p233_p1 }
   0xb   :  { %213 = vmatmul.mubr.msk.f32.gmra.mxu0 %vm32_vm0, %v18_v8  ;;  %219 = vmatmul.mubr.msk.f32.gmra.mxu1 %vm32_vm0, %v22_v9 }
   0xc   :  { %p236_p4 = pnand %p235_p3, %p229_p0 }
  0xc7   :  { %v211_v11 = vpop.f32.mrf.mxu0  ;;  %v217_v12 = vpop.f32.mrf.mxu1 }
  0xc8   :  { %v129_v13 = vadd.f32 %v211_v11, %v186_v10  ;;  %v149_v14 = vadd.f32 %v217_v12, %v186_v10 }
  0xc9   :  { %v123_v15 = vpop.f32.mrf.mxu0  ;;  %v143_v16 = vpop.f32.mrf.mxu1 }
  0xca   :  { %163 = vst [vmem:[#allocation2 + $0x8] sm:$0xff] %v129_v13  ;;  %167 = vst [vmem:[#allocation2 + $0x28] sm:$0xff] %v149_v14  ;;  %v124_v17 = vadd.f32 %v186_v10, %v123_v15  ;;  %v144_v18 = vadd.f32 %v186_v10, %v143_v16 }
  0xcb   :  { %v214_v19 = vpop.f32.mrf.mxu0  ;;  %v220_v20 = vpop.f32.mrf.mxu1 }
  0xcc   :  { %162 = vst [vmem:[#allocation2] sm:$0xff] %v124_v17  ;;  %166 = vst [vmem:[#allocation2 + $0x20] sm:$0xff] %v144_v18  ;;  %v139_v21 = vadd.f32 %v214_v19, %v186_v10  ;;  %v159_v22 = vadd.f32 %v220_v20, %v186_v10 }
  0xcd   :  { %v133_v23 = vpop.f32.mrf.mxu0  ;;  %v153_v24 = vpop.f32.mrf.mxu1 }
  0xce   :  { %165 = vst [vmem:[#allocation2 + $0x18] sm:$0xff] %v139_v21  ;;  %169 = vst [vmem:[#allocation2 + $0x38] sm:$0xff] %v159_v22  ;;  %v134_v25 = vadd.f32 %v186_v10, %v133_v23  ;;  %v154_v26 = vadd.f32 %v186_v10, %v153_v24 }
  0xd0   :  { %164 = vst [vmem:[#allocation2 + $0x10] sm:$0xff] %v134_v25  ;;  %168 = vst [vmem:[#allocation2 + $0x30] sm:$0xff] %v154_v26 }
  0xd1   :  { %239 = shalt.err (!%p236_p4)
}
  0xd2   :  { %s251_s7 = smov 128   ;;  %s252_s8 = smov 8  }
  0xd3   :  { %181 = dma.vmem_to_hbm [thread:$0]  %s176_s0, 1024, %s320_s3, [#allocation3], %s251_s7, %s251_s7, %s252_s8  }
  0xd4   :  { %248 = dma.done.wait [#allocation3], 1024  }
  0xd5   :  { %249 = vsyncadd [#allocation3], 4294966272 }
  0xd6   :  { %185 = vsyncpa [#allocation3], 1 }

</bundles_post_ra>
